<compile_context>
chip_gen: v5e
topology: v5e:2x2
jax: 0.10.0
libtpu: 0.0.40
codegen_flags: <defaults>
</compile_context>

<pallas_src>
import functools

import jax
import jax.numpy as jnp
from jax.experimental import pallas as pl
from jax.experimental.pallas import tpu as pltpu


# ---------------------------------------------------------------------------
# Activations (match PyTorch defaults: LeakyReLU slope=0.01, ELU alpha=1.0)
# ---------------------------------------------------------------------------
def _sigmoid_cheap(y):
    # sigmoid(y) == 0.5 * tanh(0.5 * y) + 0.5 : one EUP tanh, no divide on the
    # critical path (the true divide contends with exp for the EUP/long path).
    return 0.5 * jnp.tanh(0.5 * y) + 0.5


def _apply_activation(y, name):
    if name == "ReLU":
        return jnp.maximum(y, 0.0)
    if name == "Sigmoid":
        return _sigmoid_cheap(y)
    if name == "LeakyReLU":
        return jnp.where(y >= 0.0, y, 0.01 * y)
    if name == "ELU":
        # clamp the discarded branch so it never produces inf
        return jnp.where(y >= 0.0, y, jnp.expm1(jnp.minimum(y, 0.0)))
    if name == "Tanh":
        return jnp.tanh(y)
    if name == "SiLU":
        return y * _sigmoid_cheap(y)
    raise ValueError(f"unknown activation {name}")


def _round_up(n, m):
    return ((n + m - 1) // m) * m


# ---------------------------------------------------------------------------
# Fully-fused MLP kernel: one grid point per batch tile, all layers chained
# in-register.  refs = (x_ref, w0, b0, w1, b1, ..., o_ref)
# ---------------------------------------------------------------------------
def _mlp_fused_kernel(*refs, act_names):
    n_layers = len(act_names)
    x_ref = refs[0]
    o_ref = refs[1 + 2 * n_layers]

    h = x_ref[...].astype(jnp.float32)            # intermediates stay f32
    for li, act in enumerate(act_names):
        w_ref = refs[1 + 2 * li]
        b_ref = refs[2 + 2 * li]
        # Feed the MXU in the weight dtype (bf16 by default) but accumulate f32.
        y = jnp.dot(h.astype(w_ref.dtype), w_ref[...],
                    preferred_element_type=jnp.float32)
        y = y + b_ref[...].astype(jnp.float32)     # (1, d_out) broadcasts over rows
        h = _apply_activation(y, act)
    # single dtype cast, only at the final (lane-dense) HBM store
    o_ref[...] = h.astype(o_ref.dtype)


# ---------------------------------------------------------------------------
# One-time parameter preparation: zero-pad to MXU-friendly shapes and cast
# weights to the compute dtype.  Done once, NOT per forward call.
# ---------------------------------------------------------------------------
def prepare_mlp_params(params, *, compute_dtype=jnp.bfloat16, lane=128):
    """params: list of (W, b) with W of shape (in, out)  (PyTorch weight.T)."""
    dims = [params[0][0].shape[0]] + [w.shape[1] for (w, _) in params]

    dims_p = []
    for d in dims:
        d_p = _round_up(max(d, lane), lane)
        if d_p >= 256:                    # v6e/v7x MXU is 2x256^2
            d_p = _round_up(d_p, 256)
        dims_p.append(d_p)

    flat_wb = []
    for li, (w, b) in enumerate(params):
        d_in, d_out = w.shape
        d_in_p, d_out_p = dims_p[li], dims_p[li + 1]
        # Padded rows/cols MUST be exactly zero (they annihilate act(0) != 0
        # garbage from the previous layer's padded columns); bf16(0) == 0.
        w_p = jnp.zeros((d_in_p, d_out_p), jnp.float32)
        w_p = w_p.at[:d_in, :d_out].set(w.astype(jnp.float32))
        flat_wb.append(w_p.astype(compute_dtype))
        b_p = jnp.zeros((1, d_out_p), jnp.float32)
        b_p = b_p.at[0, :d_out].set(b.astype(jnp.float32))
        flat_wb.append(b_p)               # biases stay f32 (tiny)

    return {
        "dims": tuple(dims),
        "dims_p": tuple(dims_p),
        "flat_wb": tuple(flat_wb),
        "n_layers": len(params),
    }


# ---------------------------------------------------------------------------
# Forward
# ---------------------------------------------------------------------------
def mlp_forward(x, prepared, activation_list, *, tb=None):
    """Fused MLP forward: act_n(... act_0(x @ W0 + b0) ... @ Wn + bn)."""
    n_layers = prepared["n_layers"]
    dims = prepared["dims"]
    dims_p = prepared["dims_p"]
    flat_wb = prepared["flat_wb"]
    assert len(activation_list) == n_layers, (
        "Need exactly one activation per Linear layer "
        "(hidden layers + output layer).")

    B, in_dim = x.shape
    assert in_dim == dims[0]
    out_dim = dims[-1]

    # --- batch tile: small enough to keep live f32 intermediates in vregs,
    #     and >= 2 grid points so v7x's two TensorCores both get work. -------
    if tb is None:
        tb = min(256, _round_up(B, 8))
        if B > 8 and _round_up(B, tb) // tb < 2:
            tb = max(8, _round_up((B + 1) // 2, 8))
    tb = _round_up(tb, 8)
    B_p = _round_up(max(B, tb), tb)

    if B_p == B and dims_p[0] == in_dim:
        x_p = x.astype(jnp.float32)
    else:
        x_p = jnp.zeros((B_p, dims_p[0]), jnp.float32).at[:B, :in_dim].set(x)

    # --- VMEM budget (weights single-buffered + double-buffered x/out tiles) -
    bytes_wb = sum(int(a.size) * a.dtype.itemsize for a in flat_wb)
    bytes_io = 2 * tb * (dims_p[0] + dims_p[-1]) * 4
    bytes_live = 4 * tb * max(dims_p) * 4          # headroom for f32 intermediates
    vmem_limit = int(min(64 << 20,
                         max(16 << 20, 2 * bytes_wb + bytes_io + bytes_live + (2 << 20))))
    # TODO(synk): if resident weights ever exceed ~24 MiB, tile the largest
    # layer over K/N (extra grid axis or pltpu.emit_pipeline) instead of the
    # fully-resident design; v7x only has 64 MiB physical VMEM.

    # --- cost estimate so XLA schedules the pad/slice around the call -------
    flops = int(2 * B_p * sum(dims_p[i] * dims_p[i + 1] for i in range(n_layers)))
    trans_acts = {"Sigmoid", "ELU", "Tanh", "SiLU"}
    transcendentals = int(B_p * sum(dims_p[i + 1]
                                    for i, a in enumerate(activation_list)
                                    if a in trans_acts))
    bytes_accessed = int(x_p.size * 4 + bytes_wb + B_p * dims_p[-1] * 4)
    cost = pl.CostEstimate(flops=flops, transcendentals=transcendentals,
                           bytes_accessed=bytes_accessed)

    kernel = functools.partial(_mlp_fused_kernel,
                               act_names=tuple(activation_list))
    out_spec = pl.BlockSpec((tb, dims_p[-1]), lambda i: (i, 0))

    def _make_in_specs(single_buffer_weights):
        specs = [pl.BlockSpec((tb, dims_p[0]), lambda i: (i, 0))]
        for li in range(n_layers):
            w_shape = (dims_p[li], dims_p[li + 1])
            b_shape = (1, dims_p[li + 1])
            if single_buffer_weights:
                # constant block index -> resident; no dead second VMEM copy
                specs.append(pl.BlockSpec(w_shape, lambda i: (0, 0),
                                          pipeline_mode=pl.Buffered(1)))
                specs.append(pl.BlockSpec(b_shape, lambda i: (0, 0),
                                          pipeline_mode=pl.Buffered(1)))
            else:
                specs.append(pl.BlockSpec(w_shape, lambda i: (0, 0)))
                specs.append(pl.BlockSpec(b_shape, lambda i: (0, 0)))
        return specs

    def _run(single_buffer_weights):
        return pl.pallas_call(
            kernel,
            out_shape=jax.ShapeDtypeStruct((B_p, dims_p[-1]), x.dtype),
            grid_spec=pltpu.PrefetchScalarGridSpec(
                num_scalar_prefetch=0,
                grid=(B_p // tb,),
                in_specs=_make_in_specs(single_buffer_weights),
                out_specs=out_spec,
            ),
            compiler_params=pltpu.CompilerParams(
                dimension_semantics=("parallel",),   # batch tiles independent
                vmem_limit_bytes=vmem_limit,
            ),
            cost_estimate=cost,
        )(x_p, *flat_wb)

    try:
        out_p = _run(True)
    except Exception:
        # pipeline_mode / Buffered(1) unsupported on this JAX version; the
        # default double-buffered weights are still correct, just use more VMEM.
        out_p = _run(False)

    return out_p[:B, :out_dim]


# ---------------------------------------------------------------------------
# Parameter construction (PyTorch-style uniform(-1/sqrt(fan_in), 1/sqrt(fan_in)))
# ---------------------------------------------------------------------------
def init_mlp_params(key, cfg):
    dims = [cfg["input_dim"]] + list(cfg["hidden_layers"]) + [cfg["output_dim"]]
    params = []
    for i in range(len(dims) - 1):
        fan_in, fan_out = dims[i], dims[i + 1]
        key, kw, kb = jax.random.split(key, 3)
        bound = 1.0 / jnp.sqrt(fan_in)
        w = jax.random.uniform(kw, (fan_in, fan_out), jnp.float32, -bound, bound)
        b = jax.random.uniform(kb, (fan_out,), jnp.float32, -bound, bound)
        params.append((w, b))
    return params


# ---------------------------------------------------------------------------
# Pure-JAX reference for verification
# ---------------------------------------------------------------------------
def mlp_reference(x, params, activation_list):
    h = x
    for (w, b), act in zip(params, activation_list):
        h = _apply_activation(h @ w + b, act)
    return h


if __name__ == "__main__":
    # Config 1: the original example config.
    cfg_MLP = {
        "input_dim": 16,
        "output_dim": 4,
        "hidden_layers": [32, 32],
        "linear_activation_list": ["ReLU", "LeakyReLU", "Sigmoid"],
    }
    acts1 = cfg_MLP["linear_activation_list"]

    key = jax.random.PRNGKey(0)
    key, kx = jax.random.split(key)
    batch = 16
    x = jax.random.normal(kx, (batch, cfg_MLP["input_dim"]), jnp.float32)
    params = init_mlp_params(key, cfg_MLP)
    ref = mlp_reference(x, params, acts1)

    # (a) f32 weights: exact check of the fused kernel path.
    prep_f32 = prepare_mlp_params(params, compute_dtype=jnp.float32)
    out_f32 = jax.block_until_ready(mlp_forward(x, prep_f32, acts1))
    assert out_f32.shape == (batch, cfg_MLP["output_dim"])
    assert jnp.allclose(out_f32, ref, atol=1e-5, rtol=1e-5)

    # (b) bf16 weights (default, MXU-friendly): looser tolerance.
    prep_bf16 = prepare_mlp_params(params)
    out_bf16 = jax.block_until_ready(mlp_forward(x, prep_bf16, acts1))
    assert out_bf16.shape == (batch, cfg_MLP["output_dim"])
    assert jnp.allclose(out_bf16, ref, atol=3e-2, rtol=3e-2)

    # Config 2: deeper stack exercising the remaining activations, including a
    # mid-stack Sigmoid (act(0) != 0 in padded columns must be annihilated by
    # the next layer's zero-padded weight rows).
    cfg2 = {
        "input_dim": 16,
        "output_dim": 4,
        "hidden_layers": [32, 64, 32],
        "linear_activation_list": ["Sigmoid", "ELU", "Tanh", "SiLU"],
    }
    acts2 = cfg2["linear_activation_list"]
    params2 = init_mlp_params(jax.random.PRNGKey(1), cfg2)
    ref2 = mlp_reference(x, params2, acts2)

    prep2_f32 = prepare_mlp_params(params2, compute_dtype=jnp.float32)
    out2 = jax.block_until_ready(mlp_forward(x, prep2_f32, acts2))
    assert out2.shape == (batch, cfg2["output_dim"])
    assert jnp.allclose(out2, ref2, atol=1e-5, rtol=1e-5)

    prep2_bf16 = prepare_mlp_params(params2)
    out2_bf = jax.block_until_ready(mlp_forward(x, prep2_bf16, acts2))
    assert jnp.allclose(out2_bf, ref2, atol=3e-2, rtol=3e-2)

    print("KERNEL_OK")
</pallas_src>

<mosaic_0001>
module attributes {stable_mosaic.version = 11 : i64} {
  func.func @_mlp_fused_kernel(%arg0: i32, %arg1: memref<8x128xf32, #tpu.memory_space<vmem>>, %arg2: memref<128x128xf32, #tpu.memory_space<vmem>>, %arg3: memref<1x128xf32, #tpu.memory_space<vmem>>, %arg4: memref<128x128xf32, #tpu.memory_space<vmem>>, %arg5: memref<1x128xf32, #tpu.memory_space<vmem>>, %arg6: memref<128x128xf32, #tpu.memory_space<vmem>>, %arg7: memref<1x128xf32, #tpu.memory_space<vmem>>, %arg8: memref<8x128xf32, #tpu.memory_space<vmem>>) attributes {dimension_semantics = [#tpu.dimension_semantics<parallel>], iteration_bounds = array<i64: 2>, scalar_prefetch = 0 : i64, scratch_operands = 0 : i64, tpu.core_type = #tpu.core_type<tc>, window_params = [{transform_indices = @transform_0, window_bounds = array<i64: 8, 128>}, {pipeline_mode = #tpu.pipeline_mode<synchronous>, transform_indices = @transform_1, window_bounds = array<i64: 128, 128>}, {pipeline_mode = #tpu.pipeline_mode<synchronous>, transform_indices = @transform_2, window_bounds = array<i64: 1, 128>}, {pipeline_mode = #tpu.pipeline_mode<synchronous>, transform_indices = @transform_3, window_bounds = array<i64: 128, 128>}, {pipeline_mode = #tpu.pipeline_mode<synchronous>, transform_indices = @transform_4, window_bounds = array<i64: 1, 128>}, {pipeline_mode = #tpu.pipeline_mode<synchronous>, transform_indices = @transform_5, window_bounds = array<i64: 128, 128>}, {pipeline_mode = #tpu.pipeline_mode<synchronous>, transform_indices = @transform_6, window_bounds = array<i64: 1, 128>}, {transform_indices = @transform_7, window_bounds = array<i64: 8, 128>}]} {
    %c0 = arith.constant 0 : index
    %c0_0 = arith.constant 0 : index
    %0 = vector.load %arg1[%c0, %c0_0] : memref<8x128xf32, #tpu.memory_space<vmem>>, vector<8x128xf32>
    %c0_1 = arith.constant 0 : index
    %c0_2 = arith.constant 0 : index
    %1 = vector.load %arg2[%c0_1, %c0_2] : memref<128x128xf32, #tpu.memory_space<vmem>>, vector<128x128xf32>
    %cst = arith.constant dense<0.000000e+00> : vector<8x128xf32>
    %2 = tpu.matmul %0, %1, %cst {dimension_numbers = #tpu.dot_dimension_numbers<[1], [0], [0], [1], [0, 0, 1, 1], [], []>} : vector<8x128xf32>, vector<128x128xf32>, vector<8x128xf32> -> vector<8x128xf32>
    %c0_3 = arith.constant 0 : index
    %c0_4 = arith.constant 0 : index
    %3 = vector.load %arg3[%c0_3, %c0_4] : memref<1x128xf32, #tpu.memory_space<vmem>>, vector<1x128xf32>
    %4 = vector.broadcast %3 : vector<1x128xf32> to vector<8x128xf32>
    %5 = arith.addf %2, %4 : vector<8x128xf32>
    %cst_5 = arith.constant 0.000000e+00 : f32
    %6 = vector.broadcast %cst_5 : f32 to vector<8x128xf32>
    %7 = arith.maximumf %5, %6 : vector<8x128xf32>
    %c0_6 = arith.constant 0 : index
    %c0_7 = arith.constant 0 : index
    %8 = vector.load %arg4[%c0_6, %c0_7] : memref<128x128xf32, #tpu.memory_space<vmem>>, vector<128x128xf32>
    %cst_8 = arith.constant dense<0.000000e+00> : vector<8x128xf32>
    %9 = tpu.matmul %7, %8, %cst_8 {dimension_numbers = #tpu.dot_dimension_numbers<[1], [0], [0], [1], [0, 0, 1, 1], [], []>} : vector<8x128xf32>, vector<128x128xf32>, vector<8x128xf32> -> vector<8x128xf32>
    %c0_9 = arith.constant 0 : index
    %c0_10 = arith.constant 0 : index
    %10 = vector.load %arg5[%c0_9, %c0_10] : memref<1x128xf32, #tpu.memory_space<vmem>>, vector<1x128xf32>
    %11 = vector.broadcast %10 : vector<1x128xf32> to vector<8x128xf32>
    %12 = arith.addf %9, %11 : vector<8x128xf32>
    %cst_11 = arith.constant 0.000000e+00 : f32
    %13 = vector.broadcast %cst_11 : f32 to vector<8x128xf32>
    %14 = arith.cmpf oge, %12, %13 : vector<8x128xf32>
    %cst_12 = arith.constant 0.00999999977 : f32
    %15 = vector.broadcast %cst_12 : f32 to vector<8x128xf32>
    %16 = arith.mulf %15, %12 : vector<8x128xf32>
    %17 = arith.select %14, %12, %16 : vector<8x128xi1>, vector<8x128xf32>
    %c0_13 = arith.constant 0 : index
    %c0_14 = arith.constant 0 : index
    %18 = vector.load %arg6[%c0_13, %c0_14] : memref<128x128xf32, #tpu.memory_space<vmem>>, vector<128x128xf32>
    %cst_15 = arith.constant dense<0.000000e+00> : vector<8x128xf32>
    %19 = tpu.matmul %17, %18, %cst_15 {dimension_numbers = #tpu.dot_dimension_numbers<[1], [0], [0], [1], [0, 0, 1, 1], [], []>} : vector<8x128xf32>, vector<128x128xf32>, vector<8x128xf32> -> vector<8x128xf32>
    %c0_16 = arith.constant 0 : index
    %c0_17 = arith.constant 0 : index
    %20 = vector.load %arg7[%c0_16, %c0_17] : memref<1x128xf32, #tpu.memory_space<vmem>>, vector<1x128xf32>
    %21 = vector.broadcast %20 : vector<1x128xf32> to vector<8x128xf32>
    %22 = arith.addf %19, %21 : vector<8x128xf32>
    %cst_18 = arith.constant 5.000000e-01 : f32
    %23 = vector.broadcast %cst_18 : f32 to vector<8x128xf32>
    %24 = arith.mulf %23, %22 : vector<8x128xf32>
    %25 = math.tanh %24 : vector<8x128xf32>
    %cst_19 = arith.constant 5.000000e-01 : f32
    %26 = vector.broadcast %cst_19 : f32 to vector<8x128xf32>
    %27 = arith.mulf %26, %25 : vector<8x128xf32>
    %cst_20 = arith.constant 5.000000e-01 : f32
    %28 = vector.broadcast %cst_20 : f32 to vector<8x128xf32>
    %29 = arith.addf %27, %28 : vector<8x128xf32>
    %c0_21 = arith.constant 0 : index
    %c0_22 = arith.constant 0 : index
    %30 = vector.load %arg8[%c0_21, %c0_22] : memref<8x128xf32, #tpu.memory_space<vmem>>, vector<8x128xf32>
    tpu.vector_store %arg8[%c0_21, %c0_22], %29 {strides = array<i32>} : memref<8x128xf32, #tpu.memory_space<vmem>>, vector<8x128xf32>,
    return
  }
  func.func @transform_0(%arg0: i32) -> (i32, i32) {
    %c0_i32 = arith.constant 0 : i32
    %c0_i32_0 = arith.constant 0 : i32
    return %arg0, %c0_i32 : i32, i32
  }
  func.func @transform_1(%arg0: i32) -> (i32, i32) {
    %c0_i32 = arith.constant 0 : i32
    %c0_i32_0 = arith.constant 0 : i32
    %c0_i32_1 = arith.constant 0 : i32
    return %c0_i32, %c0_i32_0 : i32, i32
  }
  func.func @transform_2(%arg0: i32) -> (i32, i32) {
    %c0_i32 = arith.constant 0 : i32
    %c0_i32_0 = arith.constant 0 : i32
    %c0_i32_1 = arith.constant 0 : i32
    return %c0_i32, %c0_i32_0 : i32, i32
  }
  func.func @transform_3(%arg0: i32) -> (i32, i32) {
    %c0_i32 = arith.constant 0 : i32
    %c0_i32_0 = arith.constant 0 : i32
    %c0_i32_1 = arith.constant 0 : i32
    return %c0_i32, %c0_i32_0 : i32, i32
  }
  func.func @transform_4(%arg0: i32) -> (i32, i32) {
    %c0_i32 = arith.constant 0 : i32
    %c0_i32_0 = arith.constant 0 : i32
    %c0_i32_1 = arith.constant 0 : i32
    return %c0_i32, %c0_i32_0 : i32, i32
  }
  func.func @transform_5(%arg0: i32) -> (i32, i32) {
    %c0_i32 = arith.constant 0 : i32
    %c0_i32_0 = arith.constant 0 : i32
    %c0_i32_1 = arith.constant 0 : i32
    return %c0_i32, %c0_i32_0 : i32, i32
  }
  func.func @transform_6(%arg0: i32) -> (i32, i32) {
    %c0_i32 = arith.constant 0 : i32
    %c0_i32_0 = arith.constant 0 : i32
    %c0_i32_1 = arith.constant 0 : i32
    return %c0_i32, %c0_i32_0 : i32, i32
  }
  func.func @transform_7(%arg0: i32) -> (i32, i32) {
    %c0_i32 = arith.constant 0 : i32
    %c0_i32_0 = arith.constant 0 : i32
    return %arg0, %c0_i32 : i32, i32
  }
}

module attributes {stable_mosaic.version = 11 : i64} {
  func.func @_mlp_fused_kernel(%arg0: i32, %arg1: memref<8x128xf32, #tpu.memory_space<vmem>>, %arg2: memref<128x128xf32, #tpu.memory_space<vmem>>, %arg3: memref<1x128xf32, #tpu.memory_space<vmem>>, %arg4: memref<128x128xf32, #tpu.memory_space<vmem>>, %arg5: memref<1x128xf32, #tpu.memory_space<vmem>>, %arg6: memref<128x128xf32, #tpu.memory_space<vmem>>, %arg7: memref<1x128xf32, #tpu.memory_space<vmem>>, %arg8: memref<8x128xf32, #tpu.memory_space<vmem>>) attributes {dimension_semantics = [#tpu.dimension_semantics<parallel>], iteration_bounds = array<i64: 2>, scalar_prefetch = 0 : i64, scratch_operands = 0 : i64, tpu.core_type = #tpu.core_type<tc>, window_params = [{transform_indices = @transform_0, window_bounds = array<i64: 8, 128>}, {pipeline_mode = #tpu.pipeline_mode<synchronous>, transform_indices = @transform_1, window_bounds = array<i64: 128, 128>}, {pipeline_mode = #tpu.pipeline_mode<synchronous>, transform_indices = @transform_2, window_bounds = array<i64: 1, 128>}, {pipeline_mode = #tpu.pipeline_mode<synchronous>, transform_indices = @transform_3, window_bounds = array<i64: 128, 128>}, {pipeline_mode = #tpu.pipeline_mode<synchronous>, transform_indices = @transform_4, window_bounds = array<i64: 1, 128>}, {pipeline_mode = #tpu.pipeline_mode<synchronous>, transform_indices = @transform_5, window_bounds = array<i64: 128, 128>}, {pipeline_mode = #tpu.pipeline_mode<synchronous>, transform_indices = @transform_6, window_bounds = array<i64: 1, 128>}, {transform_indices = @transform_7, window_bounds = array<i64: 8, 128>}]} {
    %c0 = arith.constant 0 : index
    %c0_0 = arith.constant 0 : index
    %0 = vector.load %arg1[%c0, %c0_0] : memref<8x128xf32, #tpu.memory_space<vmem>>, vector<8x128xf32>
    %c0_1 = arith.constant 0 : index
    %c0_2 = arith.constant 0 : index
    %1 = vector.load %arg2[%c0_1, %c0_2] : memref<128x128xf32, #tpu.memory_space<vmem>>, vector<128x128xf32>
    %cst = arith.constant dense<0.000000e+00> : vector<8x128xf32>
    %2 = tpu.matmul %0, %1, %cst {dimension_numbers = #tpu.dot_dimension_numbers<[1], [0], [0], [1], [0, 0, 1, 1], [], []>} : vector<8x128xf32>, vector<128x128xf32>, vector<8x128xf32> -> vector<8x128xf32>
    %c0_3 = arith.constant 0 : index
    %c0_4 = arith.constant 0 : index
    %3 = vector.load %arg3[%c0_3, %c0_4] : memref<1x128xf32, #tpu.memory_space<vmem>>, vector<1x128xf32>
    %4 = vector.broadcast %3 : vector<1x128xf32> to vector<8x128xf32>
    %5 = arith.addf %2, %4 : vector<8x128xf32>
    %cst_5 = arith.constant 0.000000e+00 : f32
    %6 = vector.broadcast %cst_5 : f32 to vector<8x128xf32>
    %7 = arith.maximumf %5, %6 : vector<8x128xf32>
    %c0_6 = arith.constant 0 : index
    %c0_7 = arith.constant 0 : index
    %8 = vector.load %arg4[%c0_6, %c0_7] : memref<128x128xf32, #tpu.memory_space<vmem>>, vector<128x128xf32>
    %cst_8 = arith.constant dense<0.000000e+00> : vector<8x128xf32>
    %9 = tpu.matmul %7, %8, %cst_8 {dimension_numbers = #tpu.dot_dimension_numbers<[1], [0], [0], [1], [0, 0, 1, 1], [], []>} : vector<8x128xf32>, vector<128x128xf32>, vector<8x128xf32> -> vector<8x128xf32>
    %c0_9 = arith.constant 0 : index
    %c0_10 = arith.constant 0 : index
    %10 = vector.load %arg5[%c0_9, %c0_10] : memref<1x128xf32, #tpu.memory_space<vmem>>, vector<1x128xf32>
    %11 = vector.broadcast %10 : vector<1x128xf32> to vector<8x128xf32>
    %12 = arith.addf %9, %11 : vector<8x128xf32>
    %cst_11 = arith.constant 0.000000e+00 : f32
    %13 = vector.broadcast %cst_11 : f32 to vector<8x128xf32>
    %14 = arith.cmpf oge, %12, %13 : vector<8x128xf32>
    %cst_12 = arith.constant 0.00999999977 : f32
    %15 = vector.broadcast %cst_12 : f32 to vector<8x128xf32>
    %16 = arith.mulf %15, %12 : vector<8x128xf32>
    %17 = arith.select %14, %12, %16 : vector<8x128xi1>, vector<8x128xf32>
    %c0_13 = arith.constant 0 : index
    %c0_14 = arith.constant 0 : index
    %18 = vector.load %arg6[%c0_13, %c0_14] : memref<128x128xf32, #tpu.memory_space<vmem>>, vector<128x128xf32>
    %cst_15 = arith.constant dense<0.000000e+00> : vector<8x128xf32>
    %19 = tpu.matmul %17, %18, %cst_15 {dimension_numbers = #tpu.dot_dimension_numbers<[1], [0], [0], [1], [0, 0, 1, 1], [], []>} : vector<8x128xf32>, vector<128x128xf32>, vector<8x128xf32> -> vector<8x128xf32>
    %c0_16 = arith.constant 0 : index
    %c0_17 = arith.constant 0 : index
    %20 = vector.load %arg7[%c0_16, %c0_17] : memref<1x128xf32, #tpu.memory_space<vmem>>, vector<1x128xf32>
    %21 = vector.broadcast %20 : vector<1x128xf32> to vector<8x128xf32>
    %22 = arith.addf %19, %21 : vector<8x128xf32>
    %cst_18 = arith.constant 5.000000e-01 : f32
    %23 = vector.broadcast %cst_18 : f32 to vector<8x128xf32>
    %24 = arith.mulf %23, %22 : vector<8x128xf32>
    %25 = math.tanh %24 : vector<8x128xf32>
    %cst_19 = arith.constant 5.000000e-01 : f32
    %26 = vector.broadcast %cst_19 : f32 to vector<8x128xf32>
    %27 = arith.mulf %26, %25 : vector<8x128xf32>
    %cst_20 = arith.constant 5.000000e-01 : f32
    %28 = vector.broadcast %cst_20 : f32 to vector<8x128xf32>
    %29 = arith.addf %27, %28 : vector<8x128xf32>
    %c0_21 = arith.constant 0 : index
    %c0_22 = arith.constant 0 : index
    %30 = vector.load %arg8[%c0_21, %c0_22] : memref<8x128xf32, #tpu.memory_space<vmem>>, vector<8x128xf32>
    tpu.vector_store %arg8[%c0_21, %c0_22], %29 {strides = array<i32>} : memref<8x128xf32, #tpu.memory_space<vmem>>, vector<8x128xf32>,
    return
  }
  func.func @transform_0(%arg0: i32) -> (i32, i32) {
    %c0_i32 = arith.constant 0 : i32
    %c0_i32_0 = arith.constant 0 : i32
    return %arg0, %c0_i32 : i32, i32
  }
  func.func @transform_1(%arg0: i32) -> (i32, i32) {
    %c0_i32 = arith.constant 0 : i32
    %c0_i32_0 = arith.constant 0 : i32
    %c0_i32_1 = arith.constant 0 : i32
    return %c0_i32, %c0_i32_0 : i32, i32
  }
  func.func @transform_2(%arg0: i32) -> (i32, i32) {
    %c0_i32 = arith.constant 0 : i32
    %c0_i32_0 = arith.constant 0 : i32
    %c0_i32_1 = arith.constant 0 : i32
    return %c0_i32, %c0_i32_0 : i32, i32
  }
  func.func @transform_3(%arg0: i32) -> (i32, i32) {
    %c0_i32 = arith.constant 0 : i32
    %c0_i32_0 = arith.constant 0 : i32
    %c0_i32_1 = arith.constant 0 : i32
    return %c0_i32, %c0_i32_0 : i32, i32
  }
  func.func @transform_4(%arg0: i32) -> (i32, i32) {
    %c0_i32 = arith.constant 0 : i32
    %c0_i32_0 = arith.constant 0 : i32
    %c0_i32_1 = arith.constant 0 : i32
    return %c0_i32, %c0_i32_0 : i32, i32
  }
  func.func @transform_5(%arg0: i32) -> (i32, i32) {
    %c0_i32 = arith.constant 0 : i32
    %c0_i32_0 = arith.constant 0 : i32
    %c0_i32_1 = arith.constant 0 : i32
    return %c0_i32, %c0_i32_0 : i32, i32
  }
  func.func @transform_6(%arg0: i32) -> (i32, i32) {
    %c0_i32 = arith.constant 0 : i32
    %c0_i32_0 = arith.constant 0 : i32
    %c0_i32_1 = arith.constant 0 : i32
    return %c0_i32, %c0_i32_0 : i32, i32
  }
  func.func @transform_7(%arg0: i32) -> (i32, i32) {
    %c0_i32 = arith.constant 0 : i32
    %c0_i32_0 = arith.constant 0 : i32
    return %arg0, %c0_i32 : i32, i32
  }
}

</mosaic_0001>

<bundles_post_ra>
// kernel: tpu_custom_call.1
= control target key start
LH: loop header
LB: loop body
LE: loop exit
PB: predicated region body
PF: predicated region fallthrough
CT: control target
= control target key end

     0   :  { %s1106_s0 = inlined_call_operand.hbm [shape: f32[16,128], index: 0, kind: input, shape index: {}]   ;;  %s1107_s1 = inlined_call_operand.hbm [shape: f32[128,128], index: 1, kind: input, shape index: {}]   ;;  %s1108_s2 = inlined_call_operand.vmem [shape: f32[1,128], index: 2, kind: input, shape index: {}]   ;;  %s1109_s3 = inlined_call_operand.hbm [shape: f32[128,128], index: 3, kind: input, shape index: {}]   ;;  %s1110_s4 = inlined_call_operand.vmem [shape: f32[1,128], index: 4, kind: input, shape index: {}]   ;;  %s1111_s5 = inlined_call_operand.hbm [shape: f32[128,128], index: 5, kind: input, shape index: {}]   ;;  %s1112_s6 = inlined_call_operand.vmem [shape: f32[1,128], index: 6, kind: input, shape index: {}]   ;;  %s1113_s7 = inlined_call_operand.hbm [shape: f32[16,128], index: 7, kind: output, shape index: {}]  }
   0x1   :  { %1114 = sst [smem:[#allocation15_spill]] %s1107_s1 }
   0x2   :  { %12 = vsyncpa [#allocation3], 0 }
   0x3   :  { %14 = vsyncpa [#allocation3 + $0x1], 0 }
   0x4   :  { %15 = vsyncpa [#allocation6], 0 }
   0x5   :  { %16 = vsyncpa [#allocation9], 0 }
   0x6   :  { %17 = vsyncpa [#allocation4], 0 }
   0x7   :  { %19 = vsyncpa [#allocation4 + $0x1], 0  ;;  %s934_s24 = smov 0   ;;  %s936_s25 = smov 0  }
   0x8   :  { %s938_s26 = smov 0   ;;  %s940_s27 = smov 0  }
   0x9 LB: > { %s1115_s1 = sld [smem:[#allocation15_spill]]  ;;  %s958_s8 = sadd.s32 4294967295, %s887_s27   ;;  %s887_s27 = sphi %s940_s27, %s1126_s27   ;;  %s883_s26 = sphi %s938_s26, %s1125_s26   ;;  %s879_s25 = sphi %s936_s25, %s1124_s25   ;;  %s875_s24 = sphi %s934_s24, %s1123_s24  }
   0xa   : > { %p592_p0 = scmp.ge.s32.totalorder %s887_s27, 1  ;;  %p46_p1 = scmp.eq.s32.totalorder %s958_s8, 0 }
   0xb   : > { %p208_p2 = scmp.lt.s32.totalorder %s887_s27, 3  ;;  %s889_s10 = smov [#allocation5]  }
   0xc   : > { %s221_s11 = sshll.u32 %s889_s10, 4  ;;  %s236_s14 = sshll.u32 %s1109_s3, 4  ;;  %s222_s11 = int_to_ptr.vmem [resolvable:$true] %s221_s11  ;;  %s237_s14 = int_to_ptr.hbm [resolvable:$true] %s236_s14 }
   0xd   : > { %p963_p3 = pnand %p592_p0, %p208_p2  ;;  %s253_s18 = sshll.u32 %s1111_s5, 4  ;;  %s254_s18 = int_to_ptr.hbm [resolvable:$true] %s253_s18 }
   0xe   : > { %s890_s19 = smov [#allocation7]   ;;  %s891_s21 = smov 128  }
   0xf   : > { %s219_s30 = sshll.u32 %s1115_s1, 4  ;;  %p625_p4 = pneg %p963_p3  ;;  %s220_s30 = int_to_ptr.hbm [resolvable:$true] %s219_s30 }
  0x10   : > { %s238_s20 = sshll.u32 %s890_s19, 4  ;;  %s892_s22 = smov 8   ;;  %s239_s20 = int_to_ptr.vmem [resolvable:$true] %s238_s20 }
  0x11   : > { %p975_p6 = pnand %p625_p4, %p46_p1  ;;  %s893_s23 = smov [#allocation8]  }
  0x12   : > { %s255_s28 = sshll.u32 %s893_s23, 4  ;;  %s591_s29 = sadd.s32 4294967294, %s887_s27   ;;  %s256_s28 = int_to_ptr.vmem [resolvable:$true] %s255_s28 }
  0x13   : > { %628 = dma.hbm_to_vmem [thread:$0]  (!%p975_p6), %s220_s30, 2048, %s222_s11, [#allocation6], %s891_s21, %s891_s21, %s892_s22  }
  0x14   : > { %631 = dma.hbm_to_vmem [thread:$0]  (!%p975_p6), %s237_s14, 2048, %s239_s20, [#allocation6], %s891_s21, %s891_s21, %s892_s22  }
  0x15   : > { %634 = dma.hbm_to_vmem [thread:$0]  (!%p975_p6), %s254_s18, 2048, %s256_s28, [#allocation9], %s891_s21, %s891_s21, %s892_s22  }
  0x16   : > { %s990_s10 = sadd.s32 1, %s887_s27   ;;  %s32_s12 = sadd.s32 1, %s883_s26 }
  0x17   : > { %s29_s30 = ssub.s32 %s887_s27, %s990_s10  ;;  %p39_p7 = scmp.ne.s32.totalorder %s883_s26, %s879_s25 }
  0x18   : > { %p30_p8 = scmp.eq.s32.totalorder %s29_s30, 0  ;;  %p40_p9 = scmp.eq.s32.totalorder %s887_s27, 0 }
  0x19   : > { %p45_p10 = scmp.ne.s32.totalorder %s879_s25, %s875_s24  ;;  %p195_p11 = scmp.eq.s32.totalorder %s958_s8, 1 }
  0x1a   : > { %s1002_s11 = scalar_select %p30_p8, %s883_s26, %s32_s12  }
  0x1b   : > { %p1006_p12 = por %p46_p1, %p45_p10  ;;  %p1010_p13 = por %p195_p11, %p39_p7 }
  0x1c   : > { %p201_p0 = scmp.eq.s32.totalorder %s591_s29, 1  ;;  %p41_p2 = por %p40_p9, %p39_p7 }
  0x1d   : > { %s272_s15 = sand.u32 1, %s883_s26   ;;  %p646_p6 = scmp.lt.s32.totalorder %s887_s27, 2 }
  0x1e   : > { %p1015_p4 = por %p201_p0, %p45_p10  ;;  %s597_s17 = sshll.u32 %s272_s15, 3 }
  0x1f   : > { %s598_s18 = sshll.u32 %s887_s27, 3  ;;  %s276_s23 = scalar_lea.vmem [#allocation2], %s597_s17 }
  0x20   : > { %s280_s21 = scalar_lea.hbm %s1106_s0, %s598_s18  ;;  %s284_s28 = sshll.u32 %s276_s23, 4  ;;  %s285_s28 = int_to_ptr.vmem [resolvable:$true] %s284_s28 }
  0x21   : > { %s282_s22 = sshll.u32 %s280_s21, 4  ;;  %p1024_p8 = pnand %p646_p6, %p41_p2  ;;  %s283_s22 = int_to_ptr.hbm [resolvable:$true] %s282_s22 }
  0x22   : > { %s273_s12 = scalar_lea.sflag [#allocation3], %s272_s15  ;;  %s783_s30 = sshra.s32 %s283_s22, 4  ;;  %s784_s30 = int_to_ptr.hbm [resolvable:$true] %s783_s30 }
  0x23   : > { %s785_s1 = scalar_lea.hbm %s784_s30, 8  ;;  %p787_p9 = pneg %p1024_p8 }
  0x24   : > { %p786_p7 = scmp.ne.s32.totalorder %s784_s30, %s785_s1  ;;  %s790_s17 = scalar_lea.hbm %s1106_s0, 16 }
  0x25   : > { %p791_p0 = scmp.lt.s32.totalorder %s784_s30, %s1106_s0  ;;  %p792_p2 = scmp.lt.s32.totalorder %s790_s17, %s785_s1 }
  0x26   : > { %p788_p10 = pnand %p787_p9, %p786_p7 }
  0x27   : > { %p793_p6 = por %p792_p2, %p791_p0 }
  0x28   : > { %p789_p11 = pneg %p788_p10 }
  0x2a   : > { %p794_p5 = pnand %p793_p6, %p789_p11 }
  0x2c   : > { %797 = shalt.err (!%p794_p5)
}
  0x2d   : > { %638 = dma.hbm_to_vmem [thread:$0]  (!%p1024_p8), %s283_s22, 128, %s285_s28, %s273_s12  }
  0x2e   : > { %293 = sbr.rel (%p963_p3) target bundleno = 499 (0x1f3), region = 48  ;;  %s1041_s15 = sand.u32 (!%p963_p3), 1, %s879_s25  }
  0x2f   : > { %s600_s23 = sshll.u32 (!%p963_p3), %s1041_s15, 3  ;;  %s296_s18 = scalar_lea.sflag (!%p963_p3), [#allocation3], %s1041_s15 }
  0x30   : > { %s1047_s1 = scalar_lea.vmem (!%p963_p3), [#allocation2], %s600_s23 }
  0x33   : > { %858 = dma.done.wait (%p1006_p12), %s296_s18, 128  }
  0x34   : > { %860 = vsyncadd (%p1006_p12), %s296_s18, 4294967168 }
  0x35   : > { %862 = dma.done.wait (%p46_p1), [#allocation6], 4096  }
  0x36   : > { %864 = vsyncadd (%p46_p1), [#allocation6], 4294963200 }
  0x37   : > { %866 = dma.done.wait (%p46_p1), [#allocation9], 2048  }
  0x38   : > { %868 = vsyncadd (%p46_p1), [#allocation9], 4294965248  ;;  %v362_v0 = vld [vmem:[#allocation5 + $0x78] sm:$0xff]  ;;  %v361_v1 = vld [vmem:[#allocation5 + $0x70] sm:$0xff]  ;;  %s606_s30 = sshll.u32 %s958_s8, 3  ;;  %s345_s21 = scalar_lea.vmem [#allocation10], %s600_s23 }
  0x39   : > { %367 = vmatpush.msra.mxu0 %v362_v0  ;;  %v360_v2 = vld [vmem:[#allocation5 + $0x68] sm:$0xff]  ;;  %v359_v3 = vld [vmem:[#allocation5 + $0x60] sm:$0xff]  ;;  %v403_v4 = vld [vmem:[#allocation7 + $0x78] sm:$0xff]  ;;  %s487_s20 = scalar_lea.hbm %s1113_s7, %s606_s30  ;;  %s489_s18 = sshll.u32 %s345_s21, 4  ;;  %s490_s18 = int_to_ptr.vmem [resolvable:$true] %s489_s18 }
  0x3a   : > { %v358_v5 = vld [vmem:[#allocation5 + $0x58] sm:$0xff]  ;;  %408 = vmatpush.msra.mxu1 %v403_v4  ;;  %v402_v6 = vld [vmem:[#allocation7 + $0x70] sm:$0xff]  ;;  %v401_v7 = vld [vmem:[#allocation7 + $0x68] sm:$0xff]  ;;  %s477_s9 = scalar_lea.sflag [#allocation4], %s1041_s15  ;;  %s833_s29 = scalar_lea.hbm %s1113_s7, 16 }
  0x3b   : > { %368 = vmatpush.msra.mxu0 %v361_v1  ;;  %v357_v8 = vld [vmem:[#allocation5 + $0x50] sm:$0xff]  ;;  %v400_v9 = vld [vmem:[#allocation7 + $0x60] sm:$0xff]  ;;  %v356_v10 = vld [vmem:[#allocation5 + $0x48] sm:$0xff] }
  0x3c   : > { %409 = vmatpush.msra.mxu1 %v402_v6  ;;  %v399_v11 = vld [vmem:[#allocation7 + $0x58] sm:$0xff]  ;;  %v355_v12 = vld [vmem:[#allocation5 + $0x40] sm:$0xff]  ;;  %v398_v13 = vld [vmem:[#allocation7 + $0x50] sm:$0xff] }
  0x3d   : > { %369 = vmatpush.msra.mxu0 %v360_v2  ;;  %v354_v14 = vld [vmem:[#allocation5 + $0x38] sm:$0xff]  ;;  %v397_v15 = vld [vmem:[#allocation7 + $0x48] sm:$0xff]  ;;  %v353_v16 = vld [vmem:[#allocation5 + $0x30] sm:$0xff] }
  0x3e   : > { %410 = vmatpush.msra.mxu1 %v401_v7  ;;  %v396_v17 = vld [vmem:[#allocation7 + $0x40] sm:$0xff]  ;;  %v352_v18 = vld [vmem:[#allocation5 + $0x28] sm:$0xff]  ;;  %v395_v19 = vld [vmem:[#allocation7 + $0x38] sm:$0xff] }
  0x3f   : > { %370 = vmatpush.msra.mxu0 %v359_v3  ;;  %v351_v20 = vld [vmem:[#allocation5 + $0x20] sm:$0xff]  ;;  %v394_v21 = vld [vmem:[#allocation7 + $0x30] sm:$0xff]  ;;  %v350_v22 = vld [vmem:[#allocation5 + $0x18] sm:$0xff] }
  0x40   : > { %411 = vmatpush.msra.mxu1 %v400_v9  ;;  %v393_v23 = vld [vmem:[#allocation7 + $0x28] sm:$0xff]  ;;  %v349_v24 = vld [vmem:[#allocation5 + $0x10] sm:$0xff]  ;;  %v392_v25 = vld [vmem:[#allocation7 + $0x20] sm:$0xff] }
  0x41   : > { %371 = vmatpush.msra.mxu0 %v358_v5  ;;  %v348_v26 = vld [vmem:[#allocation5 + $0x8] sm:$0xff]  ;;  %v391_v27 = vld [vmem:[#allocation7 + $0x18] sm:$0xff]  ;;  %v347_v28 = vld [vmem:[#allocation5] sm:$0xff] }
  0x42   : > { %412 = vmatpush.msra.mxu1 %v399_v11  ;;  %v346_v29 = vld [vmem:[%s1047_s1] sm:$0xff]  ;;  %v389_v31 = vld [vmem:[#allocation7 + $0x8] sm:$0xff]  ;;  %v388_v32 = vld [vmem:[#allocation7] sm:$0xff]  ;;  %s491_s1 = sshll.u32 %s487_s20, 4  ;;  %s492_s1 = int_to_ptr.hbm [resolvable:$true] %s491_s1 }
  0x43   : > { %372 = vmatpush.msra.mxu0 %v357_v8  ;;  %v390_v30 = vld [vmem:[#allocation7 + $0x10] sm:$0xff]  ;;  %v446_v33 = vld [vmem:[#allocation8 + $0x78] sm:$0xff]  ;;  %v444_v35 = vld [vmem:[#allocation8 + $0x68] sm:$0xff]  ;;  %s827_s13 = sshra.s32 %s492_s1, 4  ;;  %s828_s13 = int_to_ptr.hbm [resolvable:$true] %s827_s13 }
  0x44   : > { %413 = vmatpush.msra.mxu1 %v398_v13  ;;  %v445_v34 = vld [vmem:[#allocation8 + $0x70] sm:$0xff]  ;;  %451 = vmatpush.msra.mxu2 %v446_v33  ;;  %v443_v36 = vld [vmem:[#allocation8 + $0x60] sm:$0xff]  ;;  %v442_v37 = vld [vmem:[#allocation8 + $0x58] sm:$0xff]  ;;  %s829_s22 = scalar_lea.hbm %s828_s13, 8  ;;  %p834_p12 = scmp.lt.s32.totalorder %s828_s13, %s1113_s7 }
  0x45   : > { %373 = vmatpush.msra.mxu0 %v356_v10  ;;  %v441_v38 = vld [vmem:[#allocation8 + $0x50] sm:$0xff]  ;;  %v440_v39 = vld [vmem:[#allocation8 + $0x48] sm:$0xff]  ;;  %v439_v40 = vld [vmem:[#allocation8 + $0x40] sm:$0xff]  ;;  %p830_p1 = scmp.ne.s32.totalorder %s828_s13, %s829_s22  ;;  %p835_p8 = scmp.lt.s32.totalorder %s833_s29, %s829_s22 }
  0x46   : > { %414 = vmatpush.msra.mxu1 %v397_v15  ;;  %452 = vmatpush.msra.mxu2 %v445_v34  ;;  %v438_v41 = vld [vmem:[#allocation8 + $0x38] sm:$0xff]  ;;  %v437_v42 = vld [vmem:[#allocation8 + $0x30] sm:$0xff]  ;;  %v436_v43 = vld [vmem:[#allocation8 + $0x28] sm:$0xff] }
  0x47   : > { %374 = vmatpush.msra.mxu0 %v355_v12  ;;  %v435_v44 = vld [vmem:[#allocation8 + $0x20] sm:$0xff]  ;;  %v434_v45 = vld [vmem:[#allocation8 + $0x18] sm:$0xff]  ;;  %v688_v46 = vld [vmem:[%s1108_s2] ss:$0 sm:$0xff]  ;;  %p831_p3 = pnand %p830_p1, %p1010_p13  ;;  %p836_p7 = por %p835_p8, %p834_p12 }
  0x48   : > { %415 = vmatpush.msra.mxu1 %v396_v17  ;;  %453 = vmatpush.msra.mxu2 %v444_v35  ;;  %v433_v50 = vld [vmem:[#allocation8 + $0x10] sm:$0xff]  ;;  %v432_v51 = vld [vmem:[#allocation8 + $0x8] sm:$0xff]  ;;  %v431_v52 = vld [vmem:[#allocation8] sm:$0xff] }
  0x49   : > { %375 = vmatpush.msra.mxu0 %v354_v14  ;;  %v689_v53 = vld [vmem:[%s1110_s4] ss:$0 sm:$0xff]  ;;  %p832_p5 = pneg %p831_p3 }
  0x4a   : > { %416 = vmatpush.msra.mxu1 %v395_v19  ;;  %454 = vmatpush.msra.mxu2 %v443_v36  ;;  %v690_v58 = vld [vmem:[%s1112_s6] ss:$0 sm:$0xff] }
  0x4b   : > { %376 = vmatpush.msra.mxu0 %v353_v16  ;;  %p837_p9 = pnand %p836_p7, %p832_p5 }
  0x4c   : > { %417 = vmatpush.msra.mxu1 %v394_v21  ;;  %455 = vmatpush.msra.mxu2 %v442_v37 }
  0x4d   : > { %377 = vmatpush.msra.mxu0 %v352_v18 }
  0x4e   : > { %418 = vmatpush.msra.mxu1 %v393_v23  ;;  %456 = vmatpush.msra.mxu2 %v441_v38 }
  0x4f   : > { %378 = vmatpush.msra.mxu0 %v351_v20 }
  0x50   : > { %419 = vmatpush.msra.mxu1 %v392_v25  ;;  %457 = vmatpush.msra.mxu2 %v440_v39 }
  0x51   : > { %379 = vmatpush.msra.mxu0 %v350_v22 }
  0x52   : > { %420 = vmatpush.msra.mxu1 %v391_v27  ;;  %458 = vmatpush.msra.mxu2 %v439_v40 }
  0x53   : > { %380 = vmatpush.msra.mxu0 %v349_v24 }
  0x54   : > { %421 = vmatpush.msra.mxu1 %v390_v30  ;;  %459 = vmatpush.msra.mxu2 %v438_v41 }
  0x55   : > { %381 = vmatpush.msra.mxu0 %v348_v26 }
  0x56   : > { %422 = vmatpush.msra.mxu1 %v389_v31  ;;  %460 = vmatpush.msra.mxu2 %v437_v42 }
  0x57   : > { %382 = vmatpush.msra.mxu0 %v347_v28 }
  0x58   : > { %383 = vmatmul.f32.vlgmr.msra.gmra.mxu0 %v346_v29  ;;  %423 = vmatpush.msra.mxu1 %v388_v32 }
  0x59   : > { %461 = vmatpush.msra.mxu2 %v436_v43 }
  0x5b   : > { %462 = vmatpush.msra.mxu2 %v435_v44 }
  0x5d   : > { %463 = vmatpush.msra.mxu2 %v434_v45 }
  0x5f   : > { %464 = vmatpush.msra.mxu2 %v433_v50 }
  0x61   : > { %465 = vmatpush.msra.mxu2 %v432_v51 }
  0x63   : > { %466 = vmatpush.msra.mxu2 %v431_v52 }
  0xd5   : > { %v384_v47 = vpop.f32.mrf.mxu0 }
  0xd6   : > { %v385_v48 = vadd.f32 %v688_v46, %v384_v47 }
  0xd8   : > { %v387_v49 = vmax.f32 %v385_v48, 0.0 }
  0xda   : > { %424 = vmatmul.f32.vlgmr.msra.gmra.mxu1 %v387_v49 }
 0x157   : > { %v425_v54 = vpop.f32.mrf.mxu1 }
 0x158   : > { %v426_v55 = vadd.f32 %v689_v53, %v425_v54 }
 0x15a   : > { %vm428_vm0 = vcmp.ge.f32.partialorder %v426_v55, 0.0  ;;  %v429_v56 = vmul.f32 0.01, %v426_v55 }
 0x15c   : > { %v430_v57 = vsel %vm428_vm0, %v426_v55, %v429_v56 }
 0x15d   : > { %467 = vmatmul.f32.vlgmr.msra.gmra.mxu2 %v430_v57 }
 0x1e0   : > { %v468_v59 = vpop.f32.mrf.mxu2 }
 0x1e1   : > { %v469_v60 = vadd.f32 %v690_v58, %v468_v59 }
 0x1e3   : > { %v471_v61 = vmul.f32 0.5, %v469_v60 }
 0x1e5   : > { %691 = vtanh.f32 %v471_v61 }
 0x1eb   : > { %v692_v62 = vpop.eup %691 }
 0x1ec   : > { %v473_v63 = vmul.f32 0.5, %v692_v62 }
 0x1ee   : > { %v474_v0 = vadd.f32 0.5, %v473_v63 }
 0x1f0   : > { %475 = vst [vmem:[%s345_s21] sm:$0xff] %v474_v0 }
 0x1f1   : > { %840 = shalt.err (!%p837_p9)
}
 0x1f2   : > { %623 = dma.vmem_to_hbm [thread:$0]  (%p1010_p13), %s490_s18, 128, %s492_s1, %s477_s9  }
 0x1f3 PF: > { %s503_s15 = sand.u32 1, %s875_s24   ;;  %p1122_p10 = scmp.ge.s32.totalorder %s887_s27, 2 }
 0x1f4   : > { %s504_s30 = scalar_lea.sflag [#allocation4], %s503_s15 }
 0x1f5   : > { %p640_p11 = pnand %p1122_p10, %p1015_p4 }
 0x1f7   : > { %p641_p0 = pneg %p640_p11 }
 0x1f9   : > { %870 = dma.done.wait (%p641_p0), %s504_s30, 128  }
 0x1fa   : > { %872 = vsyncadd (%p641_p0), %s504_s30, 4294967168  ;;  %p22_p2 = scmp.ge.s32.totalorder %s990_s10, 4   ;;  %s1123_s24 = smov %s879_s25 }
 0x1fb   : > { %s1124_s25 = smov %s883_s26  ;;  %s1125_s26 = smov %s1002_s11 }
 0x1fc   : > { %s1126_s27 = smov %s990_s10  ;;  %24 = sbr.rel (!%p22_p2) target bundleno = 9 (0x9), region = 105 }
 0x201   :  { %510 = vsyncpa [#allocation3], 1 }
 0x202   :  { %512 = vsyncpa [#allocation3 + $0x1], 1 }
 0x203   :  { %513 = vsyncpa [#allocation6], 1 }
 0x204   :  { %514 = vsyncpa [#allocation9], 1 }
 0x205   :  { %515 = vsyncpa [#allocation4], 1 }
 0x206   :  { %517 = vsyncpa [#allocation4 + $0x1], 1 }

// kernel: tpu_custom_call.1
= control target key start
LH: loop header
LB: loop body
LE: loop exit
PB: predicated region body
PF: predicated region fallthrough
CT: control target
= control target key end

     0   :  { %s1106_s0 = inlined_call_operand.hbm [shape: f32[16,128], index: 0, kind: input, shape index: {}]   ;;  %s1107_s1 = inlined_call_operand.hbm [shape: f32[128,128], index: 1, kind: input, shape index: {}]   ;;  %s1108_s2 = inlined_call_operand.vmem [shape: f32[1,128], index: 2, kind: input, shape index: {}]   ;;  %s1109_s3 = inlined_call_operand.hbm [shape: f32[128,128], index: 3, kind: input, shape index: {}]   ;;  %s1110_s4 = inlined_call_operand.vmem [shape: f32[1,128], index: 4, kind: input, shape index: {}]   ;;  %s1111_s5 = inlined_call_operand.hbm [shape: f32[128,128], index: 5, kind: input, shape index: {}]   ;;  %s1112_s6 = inlined_call_operand.vmem [shape: f32[1,128], index: 6, kind: input, shape index: {}]   ;;  %s1113_s7 = inlined_call_operand.hbm [shape: f32[16,128], index: 7, kind: output, shape index: {}]  }
   0x1   :  { %1114 = sst [smem:[#allocation15_spill]] %s1107_s1 }
   0x2   :  { %12 = vsyncpa [#allocation3], 0 }
   0x3   :  { %14 = vsyncpa [#allocation3 + $0x1], 0 }
   0x4   :  { %15 = vsyncpa [#allocation6], 0 }
   0x5   :  { %16 = vsyncpa [#allocation9], 0 }
   0x6   :  { %17 = vsyncpa [#allocation4], 0 }
   0x7   :  { %19 = vsyncpa [#allocation4 + $0x1], 0  ;;  %s934_s24 = smov 0   ;;  %s936_s25 = smov 0  }
   0x8   :  { %s938_s26 = smov 0   ;;  %s940_s27 = smov 0  }
   0x9 LB: > { %s1115_s1 = sld [smem:[#allocation15_spill]]  ;;  %s958_s8 = sadd.s32 4294967295, %s887_s27   ;;  %s887_s27 = sphi %s940_s27, %s1126_s27   ;;  %s883_s26 = sphi %s938_s26, %s1125_s26   ;;  %s879_s25 = sphi %s936_s25, %s1124_s25   ;;  %s875_s24 = sphi %s934_s24, %s1123_s24  }
   0xa   : > { %p592_p0 = scmp.ge.s32.totalorder %s887_s27, 1  ;;  %p46_p1 = scmp.eq.s32.totalorder %s958_s8, 0 }
   0xb   : > { %p208_p2 = scmp.lt.s32.totalorder %s887_s27, 3  ;;  %s889_s10 = smov [#allocation5]  }
   0xc   : > { %s221_s11 = sshll.u32 %s889_s10, 4  ;;  %s236_s14 = sshll.u32 %s1109_s3, 4  ;;  %s222_s11 = int_to_ptr.vmem [resolvable:$true] %s221_s11  ;;  %s237_s14 = int_to_ptr.hbm [resolvable:$true] %s236_s14 }
   0xd   : > { %p963_p3 = pnand %p592_p0, %p208_p2  ;;  %s253_s18 = sshll.u32 %s1111_s5, 4  ;;  %s254_s18 = int_to_ptr.hbm [resolvable:$true] %s253_s18 }
   0xe   : > { %s890_s19 = smov [#allocation7]   ;;  %s891_s21 = smov 128  }
   0xf   : > { %s219_s30 = sshll.u32 %s1115_s1, 4  ;;  %p625_p4 = pneg %p963_p3  ;;  %s220_s30 = int_to_ptr.hbm [resolvable:$true] %s219_s30 }
  0x10   : > { %s238_s20 = sshll.u32 %s890_s19, 4  ;;  %s892_s22 = smov 8   ;;  %s239_s20 = int_to_ptr.vmem [resolvable:$true] %s238_s20 }
  0x11   : > { %p975_p6 = pnand %p625_p4, %p46_p1  ;;  %s893_s23 = smov [#allocation8]  }
  0x12   : > { %s255_s28 = sshll.u32 %s893_s23, 4  ;;  %s591_s29 = sadd.s32 4294967294, %s887_s27   ;;  %s256_s28 = int_to_ptr.vmem [resolvable:$true] %s255_s28 }
  0x13   : > { %628 = dma.hbm_to_vmem [thread:$0]  (!%p975_p6), %s220_s30, 2048, %s222_s11, [#allocation6], %s891_s21, %s891_s21, %s892_s22  }
  0x14   : > { %631 = dma.hbm_to_vmem [thread:$0]  (!%p975_p6), %s237_s14, 2048, %s239_s20, [#allocation6], %s891_s21, %s891_s21, %s892_s22  }
  0x15   : > { %634 = dma.hbm_to_vmem [thread:$0]  (!%p975_p6), %s254_s18, 2048, %s256_s28, [#allocation9], %s891_s21, %s891_s21, %s892_s22  }
  0x16   : > { %s990_s10 = sadd.s32 1, %s887_s27   ;;  %s32_s12 = sadd.s32 1, %s883_s26 }
  0x17   : > { %s29_s30 = ssub.s32 %s887_s27, %s990_s10  ;;  %p39_p7 = scmp.ne.s32.totalorder %s883_s26, %s879_s25 }
  0x18   : > { %p30_p8 = scmp.eq.s32.totalorder %s29_s30, 0  ;;  %p40_p9 = scmp.eq.s32.totalorder %s887_s27, 0 }
  0x19   : > { %p45_p10 = scmp.ne.s32.totalorder %s879_s25, %s875_s24  ;;  %p195_p11 = scmp.eq.s32.totalorder %s958_s8, 1 }
  0x1a   : > { %s1002_s11 = scalar_select %p30_p8, %s883_s26, %s32_s12  }
  0x1b   : > { %p1006_p12 = por %p46_p1, %p45_p10  ;;  %p1010_p13 = por %p195_p11, %p39_p7 }
  0x1c   : > { %p201_p0 = scmp.eq.s32.totalorder %s591_s29, 1  ;;  %p41_p2 = por %p40_p9, %p39_p7 }
  0x1d   : > { %s272_s15 = sand.u32 1, %s883_s26   ;;  %p646_p6 = scmp.lt.s32.totalorder %s887_s27, 2 }
  0x1e   : > { %p1015_p4 = por %p201_p0, %p45_p10  ;;  %s597_s17 = sshll.u32 %s272_s15, 3 }
  0x1f   : > { %s598_s18 = sshll.u32 %s887_s27, 3  ;;  %s276_s23 = scalar_lea.vmem [#allocation2], %s597_s17 }
  0x20   : > { %s280_s21 = scalar_lea.hbm %s1106_s0, %s598_s18  ;;  %s284_s28 = sshll.u32 %s276_s23, 4  ;;  %s285_s28 = int_to_ptr.vmem [resolvable:$true] %s284_s28 }
  0x21   : > { %s282_s22 = sshll.u32 %s280_s21, 4  ;;  %p1024_p8 = pnand %p646_p6, %p41_p2  ;;  %s283_s22 = int_to_ptr.hbm [resolvable:$true] %s282_s22 }
  0x22   : > { %s273_s12 = scalar_lea.sflag [#allocation3], %s272_s15  ;;  %s783_s30 = sshra.s32 %s283_s22, 4  ;;  %s784_s30 = int_to_ptr.hbm [resolvable:$true] %s783_s30 }
  0x23   : > { %s785_s1 = scalar_lea.hbm %s784_s30, 8  ;;  %p787_p9 = pneg %p1024_p8 }
  0x24   : > { %p786_p7 = scmp.ne.s32.totalorder %s784_s30, %s785_s1  ;;  %s790_s17 = scalar_lea.hbm %s1106_s0, 16 }
  0x25   : > { %p791_p0 = scmp.lt.s32.totalorder %s784_s30, %s1106_s0  ;;  %p792_p2 = scmp.lt.s32.totalorder %s790_s17, %s785_s1 }
  0x26   : > { %p788_p10 = pnand %p787_p9, %p786_p7 }
  0x27   : > { %p793_p6 = por %p792_p2, %p791_p0 }
  0x28   : > { %p789_p11 = pneg %p788_p10 }
  0x2a   : > { %p794_p5 = pnand %p793_p6, %p789_p11 }
  0x2c   : > { %797 = shalt.err (!%p794_p5)
}
  0x2d   : > { %638 = dma.hbm_to_vmem [thread:$0]  (!%p1024_p8), %s283_s22, 128, %s285_s28, %s273_s12  }
  0x2e   : > { %293 = sbr.rel (%p963_p3) target bundleno = 499 (0x1f3), region = 48  ;;  %s1041_s15 = sand.u32 (!%p963_p3), 1, %s879_s25  }
  0x2f   : > { %s600_s23 = sshll.u32 (!%p963_p3), %s1041_s15, 3  ;;  %s296_s18 = scalar_lea.sflag (!%p963_p3), [#allocation3], %s1041_s15 }
  0x30   : > { %s1047_s1 = scalar_lea.vmem (!%p963_p3), [#allocation2], %s600_s23 }
  0x33   : > { %858 = dma.done.wait (%p1006_p12), %s296_s18, 128  }
  0x34   : > { %860 = vsyncadd (%p1006_p12), %s296_s18, 4294967168 }
  0x35   : > { %862 = dma.done.wait (%p46_p1), [#allocation6], 4096  }
  0x36   : > { %864 = vsyncadd (%p46_p1), [#allocation6], 4294963200 }
  0x37   : > { %866 = dma.done.wait (%p46_p1), [#allocation9], 2048  }
  0x38   : > { %868 = vsyncadd (%p46_p1), [#allocation9], 4294965248  ;;  %v362_v0 = vld [vmem:[#allocation5 + $0x78] sm:$0xff]  ;;  %v361_v1 = vld [vmem:[#allocation5 + $0x70] sm:$0xff]  ;;  %s606_s30 = sshll.u32 %s958_s8, 3  ;;  %s345_s21 = scalar_lea.vmem [#allocation10], %s600_s23 }
  0x39   : > { %367 = vmatpush.msra.mxu0 %v362_v0  ;;  %v360_v2 = vld [vmem:[#allocation5 + $0x68] sm:$0xff]  ;;  %v359_v3 = vld [vmem:[#allocation5 + $0x60] sm:$0xff]  ;;  %v403_v4 = vld [vmem:[#allocation7 + $0x78] sm:$0xff]  ;;  %s487_s20 = scalar_lea.hbm %s1113_s7, %s606_s30  ;;  %s489_s18 = sshll.u32 %s345_s21, 4  ;;  %s490_s18 = int_to_ptr.vmem [resolvable:$true] %s489_s18 }
  0x3a   : > { %v358_v5 = vld [vmem:[#allocation5 + $0x58] sm:$0xff]  ;;  %408 = vmatpush.msra.mxu1 %v403_v4  ;;  %v402_v6 = vld [vmem:[#allocation7 + $0x70] sm:$0xff]  ;;  %v401_v7 = vld [vmem:[#allocation7 + $0x68] sm:$0xff]  ;;  %s477_s9 = scalar_lea.sflag [#allocation4], %s1041_s15  ;;  %s833_s29 = scalar_lea.hbm %s1113_s7, 16 }
  0x3b   : > { %368 = vmatpush.msra.mxu0 %v361_v1  ;;  %v357_v8 = vld [vmem:[#allocation5 + $0x50] sm:$0xff]  ;;  %v400_v9 = vld [vmem:[#allocation7 + $0x60] sm:$0xff]  ;;  %v356_v10 = vld [vmem:[#allocation5 + $0x48] sm:$0xff] }
  0x3c   : > { %409 = vmatpush.msra.mxu1 %v402_v6  ;;  %v399_v11 = vld [vmem:[#allocation7 + $0x58] sm:$0xff]  ;;  %v355_v12 = vld [vmem:[#allocation5 + $0x40] sm:$0xff]  ;;  %v398_v13 = vld [vmem:[#allocation7 + $0x50] sm:$0xff] }
  0x3d   : > { %369 = vmatpush.msra.mxu0 %v360_v2  ;;  %v354_v14 = vld [vmem:[#allocation5 + $0x38] sm:$0xff]  ;;  %v397_v15 = vld [vmem:[#allocation7 + $0x48] sm:$0xff]  ;;  %v353_v16 = vld [vmem:[#allocation5 + $0x30] sm:$0xff] }
  0x3e   : > { %410 = vmatpush.msra.mxu1 %v401_v7  ;;  %v396_v17 = vld [vmem:[#allocation7 + $0x40] sm:$0xff]  ;;  %v352_v18 = vld [vmem:[#allocation5 + $0x28] sm:$0xff]  ;;  %v395_v19 = vld [vmem:[#allocation7 + $0x38] sm:$0xff] }
  0x3f   : > { %370 = vmatpush.msra.mxu0 %v359_v3  ;;  %v351_v20 = vld [vmem:[#allocation5 + $0x20] sm:$0xff]  ;;  %v394_v21 = vld [vmem:[#allocation7 + $0x30] sm:$0xff]  ;;  %v350_v22 = vld [vmem:[#allocation5 + $0x18] sm:$0xff] }
  0x40   : > { %411 = vmatpush.msra.mxu1 %v400_v9  ;;  %v393_v23 = vld [vmem:[#allocation7 + $0x28] sm:$0xff]  ;;  %v349_v24 = vld [vmem:[#allocation5 + $0x10] sm:$0xff]  ;;  %v392_v25 = vld [vmem:[#allocation7 + $0x20] sm:$0xff] }
  0x41   : > { %371 = vmatpush.msra.mxu0 %v358_v5  ;;  %v348_v26 = vld [vmem:[#allocation5 + $0x8] sm:$0xff]  ;;  %v391_v27 = vld [vmem:[#allocation7 + $0x18] sm:$0xff]  ;;  %v347_v28 = vld [vmem:[#allocation5] sm:$0xff] }
  0x42   : > { %412 = vmatpush.msra.mxu1 %v399_v11  ;;  %v346_v29 = vld [vmem:[%s1047_s1] sm:$0xff]  ;;  %v389_v31 = vld [vmem:[#allocation7 + $0x8] sm:$0xff]  ;;  %v388_v32 = vld [vmem:[#allocation7] sm:$0xff]  ;;  %s491_s1 = sshll.u32 %s487_s20, 4  ;;  %s492_s1 = int_to_ptr.hbm [resolvable:$true] %s491_s1 }
  0x43   : > { %372 = vmatpush.msra.mxu0 %v357_v8  ;;  %v390_v30 = vld [vmem:[#allocation7 + $0x10] sm:$0xff]  ;;  %v446_v33 = vld [vmem:[#allocation8 + $0x78] sm:$0xff]  ;;  %v444_v35 = vld [vmem:[#allocation8 + $0x68] sm:$0xff]  ;;  %s827_s13 = sshra.s32 %s492_s1, 4  ;;  %s828_s13 = int_to_ptr.hbm [resolvable:$true] %s827_s13 }
  0x44   : > { %413 = vmatpush.msra.mxu1 %v398_v13  ;;  %v445_v34 = vld [vmem:[#allocation8 + $0x70] sm:$0xff]  ;;  %451 = vmatpush.msra.mxu2 %v446_v33  ;;  %v443_v36 = vld [vmem:[#allocation8 + $0x60] sm:$0xff]  ;;  %v442_v37 = vld [vmem:[#allocation8 + $0x58] sm:$0xff]  ;;  %s829_s22 = scalar_lea.hbm %s828_s13, 8  ;;  %p834_p12 = scmp.lt.s32.totalorder %s828_s13, %s1113_s7 }
  0x45   : > { %373 = vmatpush.msra.mxu0 %v356_v10  ;;  %v441_v38 = vld [vmem:[#allocation8 + $0x50] sm:$0xff]  ;;  %v440_v39 = vld [vmem:[#allocation8 + $0x48] sm:$0xff]  ;;  %v439_v40 = vld [vmem:[#allocation8 + $0x40] sm:$0xff]  ;;  %p830_p1 = scmp.ne.s32.totalorder %s828_s13, %s829_s22  ;;  %p835_p8 = scmp.lt.s32.totalorder %s833_s29, %s829_s22 }
  0x46   : > { %414 = vmatpush.msra.mxu1 %v397_v15  ;;  %452 = vmatpush.msra.mxu2 %v445_v34  ;;  %v438_v41 = vld [vmem:[#allocation8 + $0x38] sm:$0xff]  ;;  %v437_v42 = vld [vmem:[#allocation8 + $0x30] sm:$0xff]  ;;  %v436_v43 = vld [vmem:[#allocation8 + $0x28] sm:$0xff] }
  0x47   : > { %374 = vmatpush.msra.mxu0 %v355_v12  ;;  %v435_v44 = vld [vmem:[#allocation8 + $0x20] sm:$0xff]  ;;  %v434_v45 = vld [vmem:[#allocation8 + $0x18] sm:$0xff]  ;;  %v688_v46 = vld [vmem:[%s1108_s2] ss:$0 sm:$0xff]  ;;  %p831_p3 = pnand %p830_p1, %p1010_p13  ;;  %p836_p7 = por %p835_p8, %p834_p12 }
  0x48   : > { %415 = vmatpush.msra.mxu1 %v396_v17  ;;  %453 = vmatpush.msra.mxu2 %v444_v35  ;;  %v433_v50 = vld [vmem:[#allocation8 + $0x10] sm:$0xff]  ;;  %v432_v51 = vld [vmem:[#allocation8 + $0x8] sm:$0xff]  ;;  %v431_v52 = vld [vmem:[#allocation8] sm:$0xff] }
  0x49   : > { %375 = vmatpush.msra.mxu0 %v354_v14  ;;  %v689_v53 = vld [vmem:[%s1110_s4] ss:$0 sm:$0xff]  ;;  %p832_p5 = pneg %p831_p3 }
  0x4a   : > { %416 = vmatpush.msra.mxu1 %v395_v19  ;;  %454 = vmatpush.msra.mxu2 %v443_v36  ;;  %v690_v58 = vld [vmem:[%s1112_s6] ss:$0 sm:$0xff] }
  0x4b   : > { %376 = vmatpush.msra.mxu0 %v353_v16  ;;  %p837_p9 = pnand %p836_p7, %p832_p5 }
  0x4c   : > { %417 = vmatpush.msra.mxu1 %v394_v21  ;;  %455 = vmatpush.msra.mxu2 %v442_v37 }
  0x4d   : > { %377 = vmatpush.msra.mxu0 %v352_v18 }
  0x4e   : > { %418 = vmatpush.msra.mxu1 %v393_v23  ;;  %456 = vmatpush.msra.mxu2 %v441_v38 }
  0x4f   : > { %378 = vmatpush.msra.mxu0 %v351_v20 }
  0x50   : > { %419 = vmatpush.msra.mxu1 %v392_v25  ;;  %457 = vmatpush.msra.mxu2 %v440_v39 }
  0x51   : > { %379 = vmatpush.msra.mxu0 %v350_v22 }
  0x52   : > { %420 = vmatpush.msra.mxu1 %v391_v27  ;;  %458 = vmatpush.msra.mxu2 %v439_v40 }
  0x53   : > { %380 = vmatpush.msra.mxu0 %v349_v24 }
  0x54   : > { %421 = vmatpush.msra.mxu1 %v390_v30  ;;  %459 = vmatpush.msra.mxu2 %v438_v41 }
  0x55   : > { %381 = vmatpush.msra.mxu0 %v348_v26 }
  0x56   : > { %422 = vmatpush.msra.mxu1 %v389_v31  ;;  %460 = vmatpush.msra.mxu2 %v437_v42 }
  0x57   : > { %382 = vmatpush.msra.mxu0 %v347_v28 }
  0x58   : > { %383 = vmatmul.f32.vlgmr.msra.gmra.mxu0 %v346_v29  ;;  %423 = vmatpush.msra.mxu1 %v388_v32 }
  0x59   : > { %461 = vmatpush.msra.mxu2 %v436_v43 }
  0x5b   : > { %462 = vmatpush.msra.mxu2 %v435_v44 }
  0x5d   : > { %463 = vmatpush.msra.mxu2 %v434_v45 }
  0x5f   : > { %464 = vmatpush.msra.mxu2 %v433_v50 }
  0x61   : > { %465 = vmatpush.msra.mxu2 %v432_v51 }
  0x63   : > { %466 = vmatpush.msra.mxu2 %v431_v52 }
  0xd5   : > { %v384_v47 = vpop.f32.mrf.mxu0 }
  0xd6   : > { %v385_v48 = vadd.f32 %v688_v46, %v384_v47 }
  0xd8   : > { %v387_v49 = vmax.f32 %v385_v48, 0.0 }
  0xda   : > { %424 = vmatmul.f32.vlgmr.msra.gmra.mxu1 %v387_v49 }
 0x157   : > { %v425_v54 = vpop.f32.mrf.mxu1 }
 0x158   : > { %v426_v55 = vadd.f32 %v689_v53, %v425_v54 }
 0x15a   : > { %vm428_vm0 = vcmp.ge.f32.partialorder %v426_v55, 0.0  ;;  %v429_v56 = vmul.f32 0.01, %v426_v55 }
 0x15c   : > { %v430_v57 = vsel %vm428_vm0, %v426_v55, %v429_v56 }
 0x15d   : > { %467 = vmatmul.f32.vlgmr.msra.gmra.mxu2 %v430_v57 }
 0x1e0   : > { %v468_v59 = vpop.f32.mrf.mxu2 }
 0x1e1   : > { %v469_v60 = vadd.f32 %v690_v58, %v468_v59 }
 0x1e3   : > { %v471_v61 = vmul.f32 0.5, %v469_v60 }
 0x1e5   : > { %691 = vtanh.f32 %v471_v61 }
 0x1eb   : > { %v692_v62 = vpop.eup %691 }
 0x1ec   : > { %v473_v63 = vmul.f32 0.5, %v692_v62 }
 0x1ee   : > { %v474_v0 = vadd.f32 0.5, %v473_v63 }
 0x1f0   : > { %475 = vst [vmem:[%s345_s21] sm:$0xff] %v474_v0 }
 0x1f1   : > { %840 = shalt.err (!%p837_p9)
}
 0x1f2   : > { %623 = dma.vmem_to_hbm [thread:$0]  (%p1010_p13), %s490_s18, 128, %s492_s1, %s477_s9  }
 0x1f3 PF: > { %s503_s15 = sand.u32 1, %s875_s24   ;;  %p1122_p10 = scmp.ge.s32.totalorder %s887_s27, 2 }
 0x1f4   : > { %s504_s30 = scalar_lea.sflag [#allocation4], %s503_s15 }
 0x1f5   : > { %p640_p11 = pnand %p1122_p10, %p1015_p4 }
 0x1f7   : > { %p641_p0 = pneg %p640_p11 }
 0x1f9   : > { %870 = dma.done.wait (%p641_p0), %s504_s30, 128  }
 0x1fa   : > { %872 = vsyncadd (%p641_p0), %s504_s30, 4294967168  ;;  %p22_p2 = scmp.ge.s32.totalorder %s990_s10, 4   ;;  %s1123_s24 = smov %s879_s25 }
 0x1fb   : > { %s1124_s25 = smov %s883_s26  ;;  %s1125_s26 = smov %s1002_s11 }
 0x1fc   : > { %s1126_s27 = smov %s990_s10  ;;  %24 = sbr.rel (!%p22_p2) target bundleno = 9 (0x9), region = 105 }
 0x201   :  { %510 = vsyncpa [#allocation3], 1 }
 0x202   :  { %512 = vsyncpa [#allocation3 + $0x1], 1 }
 0x203   :  { %513 = vsyncpa [#allocation6], 1 }
 0x204   :  { %514 = vsyncpa [#allocation9], 1 }
 0x205   :  { %515 = vsyncpa [#allocation4], 1 }
 0x206   :  { %517 = vsyncpa [#allocation4 + $0x1], 1 }

</bundles_post_ra>
